<compile_context>
chip_gen: v5e
topology: v5e:2x2
jax: 0.10.0
libtpu: 0.0.40
codegen_flags: <defaults>
</compile_context>

<pallas_src>
import jax
import jax.numpy as jnp
from jax.experimental import pallas as pl
from jax.experimental.pallas import tpu as pltpu


def _round_up(x: int, m: int) -> int:
    return ((x + m - 1) // m) * m


# ---------------------------------------------------------------------------
# Path 1: VMEM-resident tables + one-hot MXU gather (small / medium tables).
# ---------------------------------------------------------------------------
def _onehot_gather_kernel(uid_ref, iid_ref, u_tbl_ref, i_tbl_ref,
                          u_out_ref, i_out_ref):
    """One batch tile: select rows of both tables with a one-hot matmul.

    uid_ref / iid_ref    : (TB, 1) int32 id tiles, blocked over the batch
    u_tbl_ref / i_tbl_ref: full tables, VMEM-resident (single copy, no pipelining)
    u_out_ref / i_out_ref: (TB, D) lane-dense output tiles (full unmasked vst's)
    """
    tb = u_out_ref.shape[0]
    n_users = u_tbl_ref.shape[0]
    m_items = i_tbl_ref.shape[0]

    uid = uid_ref[...]                       # (TB, 1) int32
    iid = iid_ref[...]

    # One-hot selection matrices in the table dtype. With precision=HIGHEST the
    # MXU matmul reproduces the gather bit-exactly (1.0 * row + 0.0 * rest).
    u_oh = (jax.lax.broadcasted_iota(jnp.int32, (tb, n_users), 1) == uid
            ).astype(u_tbl_ref.dtype)
    i_oh = (jax.lax.broadcasted_iota(jnp.int32, (tb, m_items), 1) == iid
            ).astype(i_tbl_ref.dtype)

    u_out_ref[...] = jnp.dot(
        u_oh, u_tbl_ref[...], preferred_element_type=jnp.float32,
        precision=jax.lax.Precision.HIGHEST).astype(u_out_ref.dtype)
    i_out_ref[...] = jnp.dot(
        i_oh, i_tbl_ref[...], preferred_element_type=jnp.float32,
        precision=jax.lax.Precision.HIGHEST).astype(i_out_ref.dtype)


def _onehot_forward(uid, iid, user_table, item_table, tb, vmem_cap):
    B_pad = uid.shape[0]
    n_users, D = user_table.shape
    m_items, _ = item_table.shape
    grid = (B_pad // tb,)

    elt = user_table.dtype.itemsize
    table_bytes = (n_users + m_items) * D * elt              # single-buffered residents
    io_bytes = 2 * 2 * tb * (D + 1) * 4                      # double-buffered ids + outputs
    oh_bytes = 2 * tb * max(n_users, m_items) * (4 + elt)    # iota + one-hot temporaries
    vmem_limit = int(min(vmem_cap,
                         max(32 * 2**20, 2 * (table_bytes + io_bytes) + oh_bytes)))

    return pl.pallas_call(
        _onehot_gather_kernel,
        out_shape=(jax.ShapeDtypeStruct((B_pad, D), user_table.dtype),
                   jax.ShapeDtypeStruct((B_pad, D), item_table.dtype)),
        grid=grid,
        in_specs=[
            pl.BlockSpec((tb, 1), lambda t: (t, 0)),          # user ids (blocked)
            pl.BlockSpec((tb, 1), lambda t: (t, 0)),          # item ids (blocked)
            # Whole tables live in VMEM for the whole kernel: ONE copy, never
            # re-fetched across grid steps (i.e. single-buffered, not the 2x
            # footprint of a default-pipelined full-array blocked spec).
            pl.BlockSpec(memory_space=pltpu.MemorySpace.VMEM),
            pl.BlockSpec(memory_space=pltpu.MemorySpace.VMEM),
        ],
        out_specs=(
            pl.BlockSpec((tb, D), lambda t: (t, 0)),
            pl.BlockSpec((tb, D), lambda t: (t, 0)),
        ),
        compiler_params=pltpu.CompilerParams(
            dimension_semantics=("parallel",),                # batch tiles -> both v7x TCs
            vmem_limit_bytes=vmem_limit,
        ),
    )(uid.reshape(B_pad, 1), iid.reshape(B_pad, 1), user_table, item_table)


# ---------------------------------------------------------------------------
# Path 2: tables too large for VMEM residency -> per-row DMA gather; the row
# index_maps are driven by scalar-prefetched ids, gathered rows triple-buffered.
# ---------------------------------------------------------------------------
def _row_dma_gather_kernel(uid_ref, iid_ref, u_row_ref, i_row_ref,
                           u_out_ref, i_out_ref):
    del uid_ref, iid_ref                      # only consumed by the index_maps
    u_out_ref[...] = u_row_ref[...]
    i_out_ref[...] = i_row_ref[...]


def _row_dma_forward(uid, iid, user_table, item_table):
    B_pad = uid.shape[0]
    D = user_table.shape[1]

    return pl.pallas_call(
        _row_dma_gather_kernel,
        out_shape=(jax.ShapeDtypeStruct((B_pad, D), user_table.dtype),
                   jax.ShapeDtypeStruct((B_pad, D), item_table.dtype)),
        grid_spec=pltpu.PrefetchScalarGridSpec(
            num_scalar_prefetch=2,            # ids land in SMEM, drive the index_maps
            grid=(B_pad,),
            in_specs=[
                pl.BlockSpec((1, D), lambda b, uids, iids: (uids[b], 0),
                             pipeline_mode=pl.Buffered(3)),
                pl.BlockSpec((1, D), lambda b, uids, iids: (iids[b], 0),
                             pipeline_mode=pl.Buffered(3)),
            ],
            out_specs=(
                pl.BlockSpec((1, D), lambda b, uids, iids: (b, 0)),
                pl.BlockSpec((1, D), lambda b, uids, iids: (b, 0)),
            ),
        ),
        compiler_params=pltpu.CompilerParams(
            dimension_semantics=("arbitrary",),
            vmem_limit_bytes=32 * 2**20,
        ),
    )(uid, iid, user_table, item_table)


# ---------------------------------------------------------------------------
# Dispatcher (matches the torch forward).
# ---------------------------------------------------------------------------
def embedding_forward(user_id, item_id, user_table, item_table,
                      *, vmem_budget_frac=0.6, one_hot_max_rows=4096):
    """Returns (user_table[user_id], item_table[item_id])."""
    B = user_id.shape[0]
    n_users, D = user_table.shape
    m_items, Di = item_table.shape
    assert D == Di, "user/item latent dims must match"

    # torch.nn.Embedding raises on out-of-range ids; clamp instead of silently
    # reading neighbouring VMEM (correctness-review item).
    uid = jnp.clip(jnp.asarray(user_id, jnp.int32), 0, n_users - 1)
    iid = jnp.clip(jnp.asarray(item_id, jnp.int32), 0, m_items - 1)

    # Batch tile: sublane-aligned, capped at 1024 rows, sized so medium batches
    # give >=2 grid steps (both v7x TensorCores), and shrunk if the in-kernel
    # (TB x rows) one-hot temporaries would get large.
    TB = max(8, min(1024, _round_up((B + 1) // 2, 8)))
    max_rows = max(n_users, m_items)
    TB = min(TB, max(8, _round_up((1 << 20) // max(1, max_rows), 8)))
    B_pad = _round_up(B, TB)
    if B_pad != B:
        pad = B_pad - B
        uid = jnp.concatenate([uid, jnp.zeros((pad,), jnp.int32)])
        iid = jnp.concatenate([iid, jnp.zeros((pad,), jnp.int32)])

    # Generation-aware cutover: single-buffered resident tables must fit the
    # VMEM budget of the chip we are actually on (64 MiB/TC on v7x, 128 MiB on
    # v5e/v6e); otherwise take the row-DMA gather path.
    elt = user_table.dtype.itemsize
    table_bytes = (n_users + m_items) * D * elt
    try:
        vmem_cap = pltpu.get_tpu_info().vmem_capacity_bytes
    except Exception:
        vmem_cap = 64 * 2**20  # conservative default = v7x per-TC VMEM

    resident = (table_bytes <= vmem_budget_frac * vmem_cap
                and max_rows <= one_hot_max_rows)
    # TODO(synk): add a VMEM-resident unrolled dynamic-slice gather for tables
    # that fit VMEM but exceed one_hot_max_rows; they currently take the
    # (slower, per-row DMA) fallback path.
    if resident:
        u_out, i_out = _onehot_forward(uid, iid, user_table, item_table, TB, vmem_cap)
    else:
        u_out, i_out = _row_dma_forward(uid, iid, user_table, item_table)

    return u_out[:B], i_out[:B]


if __name__ == "__main__":
    # Deterministic synthetic parameters / inputs (small shapes).
    n_users, m_items, latent_dim = 64, 96, 128
    batch = 8

    key = jax.random.PRNGKey(0)
    k_u, k_i, k_uid, k_iid = jax.random.split(key, 4)

    # torch.nn.init.normal_(weight, std=0.01)
    user_table = (0.01 * jax.random.normal(k_u, (n_users, latent_dim))).astype(jnp.float32)
    item_table = (0.01 * jax.random.normal(k_i, (m_items, latent_dim))).astype(jnp.float32)

    user_id = jax.random.randint(k_uid, (batch,), 0, n_users, dtype=jnp.int32)
    item_id = jax.random.randint(k_iid, (batch,), 0, m_items, dtype=jnp.int32)

    u_emb, i_emb = embedding_forward(user_id, item_id, user_table, item_table)
    jax.block_until_ready((u_emb, i_emb))

    # Pure-JAX reference: forward returns the two gathered embeddings, exactly.
    ref_u = user_table[user_id]
    ref_i = item_table[item_id]
    assert u_emb.shape == (batch, latent_dim)
    assert i_emb.shape == (batch, latent_dim)
    assert jnp.array_equal(u_emb, ref_u), "user embedding gather mismatch"
    assert jnp.array_equal(i_emb, ref_i), "item embedding gather mismatch"

    print("KERNEL_OK")
</pallas_src>

<mosaic_0001>
module attributes {stable_mosaic.version = 11 : i64} {
  func.func @_onehot_gather_kernel(%arg0: i32, %arg1: memref<8x1xi32, #tpu.memory_space<vmem>>, %arg2: memref<8x1xi32, #tpu.memory_space<vmem>>, %arg3: memref<64x128xf32, #tpu.memory_space<vmem>>, %arg4: memref<96x128xf32, #tpu.memory_space<vmem>>, %arg5: memref<8x128xf32, #tpu.memory_space<vmem>>, %arg6: memref<8x128xf32, #tpu.memory_space<vmem>>) attributes {dimension_semantics = [#tpu.dimension_semantics<parallel>], iteration_bounds = array<i64: 1>, scalar_prefetch = 0 : i64, scratch_operands = 0 : i64, tpu.core_type = #tpu.core_type<tc>, window_params = [{transform_indices = @transform_0, window_bounds = array<i64: 8, 1>}, {transform_indices = @transform_1, window_bounds = array<i64: 8, 1>}, {pipeline_mode = #tpu.pipeline_mode<synchronous>, transform_indices = @transform_2, window_bounds = array<i64: 64, 128>}, {pipeline_mode = #tpu.pipeline_mode<synchronous>, transform_indices = @transform_3, window_bounds = array<i64: 96, 128>}, {transform_indices = @transform_4, window_bounds = array<i64: 8, 128>}, {transform_indices = @transform_5, window_bounds = array<i64: 8, 128>}]} {
    %c0 = arith.constant 0 : index
    %c0_0 = arith.constant 0 : index
    %0 = vector.load %arg1[%c0, %c0_0] : memref<8x1xi32, #tpu.memory_space<vmem>>, vector<8x1xi32>
    %c0_1 = arith.constant 0 : index
    %c0_2 = arith.constant 0 : index
    %1 = vector.load %arg2[%c0_1, %c0_2] : memref<8x1xi32, #tpu.memory_space<vmem>>, vector<8x1xi32>
    %2 = tpu.iota {dimensions = array<i32: 1>} : vector<8x64xi32>
    %3 = vector.broadcast %0 : vector<8x1xi32> to vector<8x64xi32>
    %4 = arith.cmpi eq, %2, %3 : vector<8x64xi32>
    %5 = arith.extui %4 : vector<8x64xi1> to vector<8x64xi32>
    %6 = arith.sitofp %5 : vector<8x64xi32> to vector<8x64xf32>
    %7 = tpu.iota {dimensions = array<i32: 1>} : vector<8x96xi32>
    %8 = vector.broadcast %1 : vector<8x1xi32> to vector<8x96xi32>
    %9 = arith.cmpi eq, %7, %8 : vector<8x96xi32>
    %10 = arith.extui %9 : vector<8x96xi1> to vector<8x96xi32>
    %11 = arith.sitofp %10 : vector<8x96xi32> to vector<8x96xf32>
    %c0_3 = arith.constant 0 : index
    %c0_4 = arith.constant 0 : index
    %12 = vector.load %arg3[%c0_3, %c0_4] : memref<64x128xf32, #tpu.memory_space<vmem>>, vector<64x128xf32>
    %cst = arith.constant dense<0.000000e+00> : vector<8x128xf32>
    %13 = tpu.matmul %6, %12, %cst {dimension_numbers = #tpu.dot_dimension_numbers<[1], [0], [0], [1], [0, 0, 1, 1], [], []>, precision = #tpu.contract_precision<fp32>} : vector<8x64xf32>, vector<64x128xf32>, vector<8x128xf32> -> vector<8x128xf32>
    %c0_5 = arith.constant 0 : index
    %c0_6 = arith.constant 0 : index
    %14 = vector.load %arg5[%c0_5, %c0_6] : memref<8x128xf32, #tpu.memory_space<vmem>>, vector<8x128xf32>
    tpu.vector_store %arg5[%c0_5, %c0_6], %13 {strides = array<i32>} : memref<8x128xf32, #tpu.memory_space<vmem>>, vector<8x128xf32>,
    %c0_7 = arith.constant 0 : index
    %c0_8 = arith.constant 0 : index
    %15 = vector.load %arg4[%c0_7, %c0_8] : memref<96x128xf32, #tpu.memory_space<vmem>>, vector<96x128xf32>
    %cst_9 = arith.constant dense<0.000000e+00> : vector<8x128xf32>
    %16 = tpu.matmul %11, %15, %cst_9 {dimension_numbers = #tpu.dot_dimension_numbers<[1], [0], [0], [1], [0, 0, 1, 1], [], []>, precision = #tpu.contract_precision<fp32>} : vector<8x96xf32>, vector<96x128xf32>, vector<8x128xf32> -> vector<8x128xf32>
    %c0_10 = arith.constant 0 : index
    %c0_11 = arith.constant 0 : index
    %17 = vector.load %arg6[%c0_10, %c0_11] : memref<8x128xf32, #tpu.memory_space<vmem>>, vector<8x128xf32>
    tpu.vector_store %arg6[%c0_10, %c0_11], %16 {strides = array<i32>} : memref<8x128xf32, #tpu.memory_space<vmem>>, vector<8x128xf32>,
    return
  }
  func.func @transform_0(%arg0: i32) -> (i32, i32) {
    %c0_i32 = arith.constant 0 : i32
    %c0_i32_0 = arith.constant 0 : i32
    return %arg0, %c0_i32 : i32, i32
  }
  func.func @transform_1(%arg0: i32) -> (i32, i32) {
    %c0_i32 = arith.constant 0 : i32
    %c0_i32_0 = arith.constant 0 : i32
    return %arg0, %c0_i32 : i32, i32
  }
  func.func @transform_2(%arg0: i32) -> (i32, i32) {
    %c0_i32 = arith.constant 0 : i32
    %c0_i32_0 = arith.constant 0 : i32
    %c0_i32_1 = arith.constant 0 : i32
    return %c0_i32, %c0_i32_0 : i32, i32
  }
  func.func @transform_3(%arg0: i32) -> (i32, i32) {
    %c0_i32 = arith.constant 0 : i32
    %c0_i32_0 = arith.constant 0 : i32
    %c0_i32_1 = arith.constant 0 : i32
    return %c0_i32, %c0_i32_0 : i32, i32
  }
  func.func @transform_4(%arg0: i32) -> (i32, i32) {
    %c0_i32 = arith.constant 0 : i32
    %c0_i32_0 = arith.constant 0 : i32
    return %arg0, %c0_i32 : i32, i32
  }
  func.func @transform_5(%arg0: i32) -> (i32, i32) {
    %c0_i32 = arith.constant 0 : i32
    %c0_i32_0 = arith.constant 0 : i32
    return %arg0, %c0_i32 : i32, i32
  }
}

</mosaic_0001>

<bundles_post_ra>
// kernel: tpu_custom_call.1
= control target key start
LH: loop header
LB: loop body
LE: loop exit
PB: predicated region body
PF: predicated region fallthrough
CT: control target
= control target key end

     0   :  { %11 = vsyncpa [#allocation3], 0  ;;  %s1144_s0 = inlined_call_operand.vmem [shape: s32[8,1], index: 0, kind: input, shape index: {}]   ;;  %s1145_s1 = inlined_call_operand.vmem [shape: s32[8,1], index: 1, kind: input, shape index: {}]   ;;  %s1146_s2 = inlined_call_operand.hbm [shape: f32[64,128], index: 2, kind: input, shape index: {}]   ;;  %s1147_s3 = inlined_call_operand.hbm [shape: f32[96,128], index: 3, kind: input, shape index: {}]   ;;  %s1148_s4 = inlined_call_operand.hbm [shape: f32[8,128], index: 4, kind: output, shape index: {0}]   ;;  %s1149_s5 = inlined_call_operand.hbm [shape: f32[8,128], index: 5, kind: output, shape index: {1}]  }
   0x1   :  { %12 = vsyncpa [#allocation6], 0 }
   0x2   :  { %13 = vsyncpa [#allocation4], 0 }
   0x3   :  { %14 = vsyncpa [#allocation9], 0  ;;  %s23_s20 = sshll.u32 %s1146_s2, 4  ;;  %s780_s21 = smov [#allocation2]   ;;  %s24_s20 = int_to_ptr.hbm [resolvable:$true] %s23_s20 }
   0x4   :  { %s25_s22 = sshll.u32 %s780_s21, 4  ;;  %s36_s25 = sshll.u32 %s1147_s3, 4  ;;  %s26_s22 = int_to_ptr.vmem [resolvable:$true] %s25_s22  ;;  %s37_s25 = int_to_ptr.hbm [resolvable:$true] %s36_s25 }
   0x5   :  { %s781_s26 = smov 128   ;;  %s782_s27 = smov 8  }
   0x6   :  { %31 = dma.hbm_to_vmem [thread:$0]  %s24_s20, 1024, %s26_s22, [#allocation3], %s781_s26, %s781_s26, %s782_s27  }
   0x7   :  { %s783_s28 = smov [#allocation5]  }
   0x8   :  { %s38_s29 = sshll.u32 %s783_s28, 4  ;;  %s39_s29 = int_to_ptr.vmem [resolvable:$true] %s38_s29 }
   0x9   :  { %44 = dma.hbm_to_vmem [thread:$0]  %s37_s25, 1536, %s39_s29, [#allocation6], %s781_s26, %s781_s26, %s782_s27  }
   0xa   :  { %772 = dma.done.wait [#allocation3], 1024  }
   0xb   :  { %773 = vsyncadd [#allocation3], 4294966272 }
   0xc   :  { %774 = dma.done.wait [#allocation6], 1536  }
   0xd   :  { %775 = vsyncadd [#allocation6], 4294965760  ;;  %v784_v0 = vmov 0   ;;  %v53_v1 = vld [vmem:[%s1144_s0] sm:$0xff]  ;;  %v76_v2 = vld [vmem:[#allocation2 + $0x38] sm:$0xff]  ;;  %vm77_vm0 = vcmask 523264  }
   0xe   :  { %675 = vset.pattern.permute.xlu0 %v784_v0  ;;  %v827_v3 = vand.u32 4294901760, %v76_v2  ;;  %v75_v4 = vld [vmem:[#allocation2 + $0x30] sm:$0xff]  ;;  %v74_v5 = vld [vmem:[#allocation2 + $0x28] sm:$0xff]  ;;  %v73_v6 = vld [vmem:[#allocation2 + $0x20] sm:$0xff]  ;;  %vm331_vm2 = vcmask 785408   ;;  %s632_s9 = sshll.u32 %s1148_s4, 4  ;;  %s633_s9 = int_to_ptr.hbm [resolvable:$true] %s632_s9 }
   0xf   :  { %58 = vperm.xlu0 %675, %v53_v1   ;;  %v829_v7 = vand.u32 4294901760, %v75_v4  ;;  %v831_v8 = vand.u32 4294901760, %v74_v5  ;;  %v833_v9 = vand.u32 4294901760, %v73_v6  ;;  %v72_v10 = vld [vmem:[#allocation2 + $0x18] sm:$0xff]  ;;  %v71_v11 = vld [vmem:[#allocation2 + $0x10] sm:$0xff]  ;;  %v70_v12 = vld [vmem:[#allocation2 + $0x8] sm:$0xff] }
  0x10   :  { %v836_v13 = vsub.f32 %v76_v2, %v827_v3  ;;  %222 = vmatpush.msra.mxu3 %v827_v3  ;;  %v839_v14 = vand.u32 4294901760, %v72_v10  ;;  %v841_v15 = vand.u32 4294901760, %v71_v11  ;;  %v843_v16 = vand.u32 4294901760, %v70_v12  ;;  %90 = vmatpush.msra.mxu0 %v827_v3  ;;  %v69_v17 = vld [vmem:[#allocation2] sm:$0xff]  ;;  %v330_v22 = vld [vmem:[#allocation5 + $0x58] sm:$0xff]  ;;  %v329_v31 = vld [vmem:[#allocation5 + $0x50] sm:$0xff] }
  0x11   :  { %v847_v18 = vsub.f32 %v75_v4, %v829_v7  ;;  %v850_v19 = vsub.f32 %v74_v5, %v831_v8  ;;  %v853_v20 = vsub.f32 %v73_v6, %v833_v9  ;;  %v855_v21 = vand.u32 4294901760, %v69_v17  ;;  %v54_v27 = vld [vmem:[%s1145_s1] sm:$0xff]  ;;  %v328_v44 = vld [vmem:[#allocation5 + $0x48] sm:$0xff]  ;;  %v326_v48 = vld [vmem:[#allocation5 + $0x38] sm:$0xff]  ;;  %s786_s1 = smov [#allocation7]   ;;  %s787_s10 = smov [#allocation8]  }
  0x12   :  { %185 = vmatpush.msra.mxu2 %v836_v13  ;;  %224 = vmatpush.msra.mxu3 %v829_v7  ;;  %v124_v23 = vand.u32 4294901760, %v836_v13  ;;  %v861_v24 = vsub.f32 %v72_v10, %v839_v14  ;;  %v864_v25 = vsub.f32 %v71_v11, %v841_v15  ;;  %v867_v26 = vsub.f32 %v70_v12, %v843_v16  ;;  %v327_v45 = vld [vmem:[#allocation5 + $0x40] sm:$0xff]  ;;  %v325_v49 = vld [vmem:[#allocation5 + $0x30] sm:$0xff]  ;;  %v324_v54 = vld [vmem:[#allocation5 + $0x28] sm:$0xff]  ;;  %s630_s6 = sshll.u32 %s786_s1, 4  ;;  %s641_s11 = sshll.u32 %s787_s10, 4  ;;  %s631_s6 = int_to_ptr.vmem [resolvable:$true] %s630_s6  ;;  %s642_s11 = int_to_ptr.vmem [resolvable:$true] %s641_s11 }
  0x13   :  { %v130_v28 = vand.u32 4294901760, %v847_v18  ;;  %v136_v29 = vand.u32 4294901760, %v850_v19  ;;  %v142_v30 = vand.u32 4294901760, %v853_v20  ;;  %92 = vmatpush.msra.mxu0 %v829_v7  ;;  %v883_v35 = vand.u32 4294901760, %v330_v22  ;;  %v323_v63 = vld [vmem:[#allocation5 + $0x20] sm:$0xff]  ;;  %s643_s4 = sshll.u32 %s1149_s5, 4  ;;  %s644_s4 = int_to_ptr.hbm [resolvable:$true] %s643_s4 }
  0x14   :  { %188 = vmatpush.msra.mxu2 %v847_v18  ;;  %v125_v32 = vsub.f32 %v836_v13, %v124_v23  ;;  %226 = vmatpush.msra.mxu3 %v831_v8  ;;  %v148_v33 = vand.u32 4294901760, %v861_v24  ;;  %v154_v34 = vand.u32 4294901760, %v864_v25  ;;  %v160_v39 = vand.u32 4294901760, %v867_v26 }
  0x15   :  { %v131_v36 = vsub.f32 %v847_v18, %v130_v28  ;;  %v137_v37 = vsub.f32 %v850_v19, %v136_v29  ;;  %v143_v38 = vsub.f32 %v853_v20, %v142_v30  ;;  %94 = vmatpush.msra.mxu0 %v831_v8  ;;  %v901_v42 = vsub.f32 %v69_v17, %v855_v21 }
  0x16   :  { %191 = vmatpush.msra.mxu2 %v850_v19  ;;  %v126_v40 = vand.u32 4294901760, %v125_v32  ;;  %v149_v41 = vsub.f32 %v861_v24, %v148_v33  ;;  %v903_v43 = vand.u32 4294901760, %v329_v31  ;;  %228 = vmatpush.msra.mxu3 %v833_v9  ;;  %v155_v47 = vsub.f32 %v864_v25, %v154_v34 }
  0x17   :  { %64 = vperm.xlu0 %675, %v54_v27   ;;  %v132_v46 = vand.u32 4294901760, %v131_v36  ;;  %96 = vmatpush.msra.mxu0 %v833_v9  ;;  %v138_v50 = vand.u32 4294901760, %v137_v37  ;;  %v144_v51 = vand.u32 4294901760, %v143_v38  ;;  %v161_v52 = vsub.f32 %v867_v26, %v160_v39 }
  0x18   :  { %127 = vmatpush.msra.mxu1 %v126_v40  ;;  %194 = vmatpush.msra.mxu2 %v853_v20  ;;  %v915_v53 = vsub.f32 %v330_v22, %v883_v35  ;;  %v150_v55 = vand.u32 4294901760, %v149_v41  ;;  %v918_v56 = vand.u32 4294901760, %v328_v44  ;;  %v921_v57 = vsub.f32 %v329_v31, %v903_v43  ;;  %v320_v20 = vld [vmem:[#allocation5 + $0x8] sm:$0xff] }
  0x19   :  { %230 = vmatpush.msra.mxu3 %v839_v14  ;;  %v923_v58 = vand.u32 4294901760, %v327_v45  ;;  %98 = vmatpush.msra.mxu0 %v839_v14  ;;  %v166_v60 = vand.u32 4294901760, %v901_v42  ;;  %v929_v61 = vand.u32 4294901760, %v326_v48  ;;  %v931_v62 = vand.u32 4294901760, %v325_v49 }
  0x1a   :  { %133 = vmatpush.msra.mxu1 %v132_v46  ;;  %197 = vmatpush.msra.mxu2 %v861_v24  ;;  %v378_v59 = vand.u32 4294901760, %v915_v53  ;;  %v384_v0 = vand.u32 4294901760, %v921_v57  ;;  %v936_v1 = vsub.f32 %v328_v44, %v918_v56  ;;  %v942_v4 = vand.u32 4294901760, %v324_v54 }
  0x1b   :  { %232 = vmatpush.msra.mxu3 %v841_v15  ;;  %v939_v2 = vsub.f32 %v327_v45, %v923_v58  ;;  %100 = vmatpush.msra.mxu0 %v841_v15  ;;  %v156_v5 = vand.u32 4294901760, %v155_v47  ;;  %v949_v10 = vsub.f32 %v326_v48, %v929_v61  ;;  %v952_v11 = vsub.f32 %v325_v49, %v931_v62 }
  0x1c   :  { %139 = vmatpush.msra.mxu1 %v138_v50  ;;  %200 = vmatpush.msra.mxu2 %v864_v25  ;;  %v379_v6 = vsub.f32 %v915_v53, %v378_v59  ;;  %v385_v12 = vsub.f32 %v921_v57, %v384_v0  ;;  %v390_v17 = vand.u32 4294901760, %v936_v1  ;;  %v961_v27 = vand.u32 4294901760, %v323_v63 }
  0x1d   :  { %234 = vmatpush.msra.mxu3 %v843_v16  ;;  %v396_v22 = vand.u32 4294901760, %v939_v2  ;;  %102 = vmatpush.msra.mxu0 %v843_v16  ;;  %v167_v32 = vsub.f32 %v901_v42, %v166_v60  ;;  %v402_v36 = vand.u32 4294901760, %v949_v10  ;;  %v969_v37 = vsub.f32 %v324_v54, %v942_v4 }
  0x1e   :  { %145 = vmatpush.msra.mxu1 %v144_v51  ;;  %203 = vmatpush.msra.mxu2 %v867_v26  ;;  %v380_v31 = vand.u32 4294901760, %v379_v6  ;;  %v386_v38 = vand.u32 4294901760, %v385_v12  ;;  %v391_v40 = vsub.f32 %v936_v1, %v390_v17  ;;  %v162_v41 = vand.u32 4294901760, %v161_v52  ;;  %v319_v26 = vld [vmem:[#allocation5] sm:$0xff] }
  0x1f   :  { %236 = vmatpush.msra.mxu3 %v855_v21  ;;  %104 = vmatpush.msra.mxu0 %v855_v21  ;;  %v397_v44 = vsub.f32 %v939_v2, %v396_v22  ;;  %v408_v45 = vand.u32 4294901760, %v952_v11  ;;  %v982_v46 = vsub.f32 %v323_v63, %v961_v27  ;;  %v168_v48 = vand.u32 4294901760, %v167_v32 }
  0x20   :  { %151 = vmatpush.msra.mxu1 %v150_v55  ;;  %206 = vmatpush.msra.mxu2 %v901_v42  ;;  %v392_v47 = vand.u32 4294901760, %v391_v40  ;;  %v403_v49 = vsub.f32 %v949_v10, %v402_v36  ;;  %v414_v50 = vand.u32 4294901760, %v969_v37  ;;  %v1040_v25 = vand.u32 4294901760, %v320_v20 }
  0x21   :  { %381 = vmatpush.msrb.mxu3 %v380_v31  ;;  %255 = vmatpush.msrb.mxu0 %v124_v23  ;;  %v398_v51 = vand.u32 4294901760, %v397_v44  ;;  %v409_v52 = vsub.f32 %v952_v11, %v408_v45  ;;  %v420_v54 = vand.u32 4294901760, %v982_v46  ;;  %v55_v32 = vlaneseq }
  0x22   :  { %340 = vmatpush.msrb.mxu2 %v883_v35  ;;  %157 = vmatpush.msra.mxu1 %v156_v5  ;;  %v404_v13 = vand.u32 4294901760, %v403_v49  ;;  %v415_v23 = vsub.f32 %v969_v37, %v414_v50 }
  0x23   :  { %387 = vmatpush.msrb.mxu3 %v386_v38  ;;  %259 = vmatpush.msrb.mxu0 %v130_v28  ;;  %v410_v18 = vand.u32 4294901760, %v409_v52  ;;  %v421_v28 = vsub.f32 %v982_v46, %v420_v54  ;;  %v56_v38 = vand.u32 127, %v55_v32 }
  0x24   :  { %342 = vmatpush.msrb.mxu2 %v903_v43  ;;  %163 = vmatpush.msra.mxu1 %v162_v41  ;;  %v416_v19 = vand.u32 4294901760, %v415_v23  ;;  %v785_v41 = vmov 0.0  }
  0x25   :  { %393 = vmatpush.msrb.mxu3 %v392_v47  ;;  %263 = vmatpush.msrb.mxu0 %v136_v29  ;;  %v422_v29 = vand.u32 4294901760, %v421_v28 }
  0x26   :  { %344 = vmatpush.msrb.mxu2 %v918_v56  ;;  %169 = vmatpush.msra.mxu1 %v168_v48 }
  0x27   :  { %399 = vmatpush.msrb.mxu3 %v398_v51  ;;  %267 = vmatpush.msrb.mxu0 %v142_v30  ;;  %v1050_v30 = vand.u32 4294901760, %v319_v26 }
  0x28   :  { %298 = vmatpush.msrb.mxu1 %v827_v3  ;;  %346 = vmatpush.msrb.mxu2 %v923_v58  ;;  %v322_v3 = vld [vmem:[#allocation5 + $0x18] sm:$0xff] }
  0x29   :  { %405 = vmatpush.msrb.mxu3 %v404_v13  ;;  %271 = vmatpush.msrb.mxu0 %v148_v33  ;;  %v1053_v33 = vsub.f32 %v320_v20, %v1040_v25  ;;  %v1061_v55 = vsub.f32 %v319_v26, %v1050_v30 }
  0x2a   :  { %300 = vmatpush.msrb.mxu1 %v829_v7  ;;  %348 = vmatpush.msrb.mxu2 %v929_v61  ;;  %v1025_v7 = vand.u32 4294901760, %v322_v3 }
  0x2b   :  { %411 = vmatpush.msrb.mxu3 %v410_v18  ;;  %275 = vmatpush.msrb.mxu0 %v154_v34  ;;  %v438_v42 = vand.u32 4294901760, %v1053_v33  ;;  %v444_v5 = vand.u32 4294901760, %v1061_v55 }
  0x2c   :  { %302 = vmatpush.msrb.mxu1 %v831_v8  ;;  %350 = vmatpush.msrb.mxu2 %v931_v62  ;;  %v321_v8 = vld [vmem:[#allocation5 + $0x10] sm:$0xff] }
  0x2d   :  { %417 = vmatpush.msrb.mxu3 %v416_v19  ;;  %279 = vmatpush.msrb.mxu0 %v160_v39  ;;  %v439_v63 = vsub.f32 %v1053_v33, %v438_v42  ;;  %v445_v12 = vsub.f32 %v1061_v55, %v444_v5 }
  0x2e   :  { %304 = vmatpush.msrb.mxu1 %v833_v9  ;;  %352 = vmatpush.msrb.mxu2 %v942_v4  ;;  %v1033_v9 = vand.u32 4294901760, %v321_v8 }
  0x2f   :  { %423 = vmatpush.msrb.mxu3 %v422_v29  ;;  %283 = vmatpush.msrb.mxu0 %v166_v60  ;;  %v440_v6 = vand.u32 4294901760, %v439_v63  ;;  %v446_v31 = vand.u32 4294901760, %v445_v12 }
  0x30   :  { %306 = vmatpush.msrb.mxu1 %v839_v14  ;;  %354 = vmatpush.msrb.mxu2 %v961_v27  ;;  %v1036_v14 = vsub.f32 %v322_v3, %v1025_v7 }
  0x32   :  { %308 = vmatpush.msrb.mxu1 %v841_v15  ;;  %356 = vmatpush.msrb.mxu2 %v1025_v7  ;;  %v426_v24 = vand.u32 4294901760, %v1036_v14  ;;  %v1043_v15 = vsub.f32 %v321_v8, %v1033_v9 }
  0x34   :  { %310 = vmatpush.msrb.mxu1 %v843_v16  ;;  %358 = vmatpush.msrb.mxu2 %v1033_v9  ;;  %v427_v16 = vsub.f32 %v1036_v14, %v426_v24 }
  0x36   :  { %312 = vmatpush.msrb.mxu1 %v855_v21  ;;  %360 = vmatpush.msrb.mxu2 %v1040_v25  ;;  %v432_v21 = vand.u32 4294901760, %v1043_v15  ;;  %v428_v34 = vand.u32 4294901760, %v427_v16 }
  0x38   :  { %v433_v39 = vsub.f32 %v1043_v15, %v432_v21  ;;  %362 = vmatpush.msrb.mxu2 %v1050_v30  ;;  %429 = vmatpush.msrb.mxu3 %v428_v34 }
  0x3a   :  { %v434_v60 = vand.u32 4294901760, %v433_v39 }
  0x3c   :  { %435 = vmatpush.msrb.mxu3 %v434_v60 }
  0x3e   :  { %441 = vmatpush.msrb.mxu3 %v440_v6 }
  0x40   :  { %447 = vmatpush.msrb.mxu3 %v446_v31 }
  0x81   :  { %v59_v40 = vpop.permute.xlu0 %58 }
  0x82   :  { %vm60_vm1 = vcmp.eq.s32.totalorder %v56_v38, %v59_v40 }
  0x83   :  { %v659_v44 = vsel %vm60_vm1, 1.0, %v785_v41 }
  0x84   :  { %661 = vmatmul.msk.f32.vlgmr.msra.gmra.mxu1 %vm77_vm0, %v659_v44  ;;  %v79_v47 = vsel %vm77_vm0, %v659_v44, 0 }
  0x85   :  { %504 = vmatpush.msra.mxu1 %v883_v35  ;;  %v106_v48 = vsub.f32 %v79_v47, %v79_v47 }
  0x87   :  { %506 = vmatpush.msra.mxu1 %v903_v43  ;;  %209 = vmatmul.f32.vlgmr.msra.gmra.mxu2 %v106_v48  ;;  %v107_v49 = vand.u32 4294901760, %v106_v48 }
  0x88   :  { %541 = vmatpush.msra.mxu2 %v378_v59 }
  0x89   :  { %508 = vmatpush.msra.mxu1 %v918_v56  ;;  %240 = vmatmul.f32.vlgmr.msra.gmra.mxu3 %v107_v49  ;;  %v65_v51 = vpop.permute.xlu0 %64  ;;  %v108_v52 = vsub.f32 %v106_v48, %v107_v49 }
  0x8a   :  { %545 = vmatpush.msra.mxu2 %v384_v0  ;;  %596 = vmatpush.msra.mxu3 %v883_v35  ;;  %vm66_vm3 = vcmp.eq.s32.totalorder %v56_v38, %v65_v51 }
  0x8b   :  { %v660_v13 = vsel %vm66_vm3, 1.0, %v785_v41  ;;  %510 = vmatpush.msra.mxu1 %v923_v58  ;;  %v109_v23 = vand.u32 4294901760, %v108_v52 }
  0x8c   :  { %549 = vmatpush.msra.mxu2 %v390_v17  ;;  %598 = vmatpush.msra.mxu3 %v903_v43  ;;  %v333_v59 = vsel %vm331_vm2, %v660_v13, 0 }
  0x8d   :  { %663 = vmatmul.msk.f32.vlgmr.msrb.gmra.mxu1 %vm77_vm0, %v659_v44  ;;  %110 = vmatmul.f32.vlgmr.msra.gmra.mxu0 %v109_v23  ;;  %v364_v18 = vsub.f32 %v333_v59, %v333_v59 }
  0x8e   :  { %512 = vmatpush.msra.mxu1 %v929_v61  ;;  %459 = vmatpush.msra.mxu0 %v915_v53 }
  0x8f   :  { %553 = vmatpush.msra.mxu2 %v396_v22  ;;  %600 = vmatpush.msra.mxu3 %v918_v56  ;;  %v365_v35 = vand.u32 4294901760, %v364_v18 }
  0x90   :  { %514 = vmatpush.msra.mxu1 %v931_v62  ;;  %462 = vmatpush.msra.mxu0 %v921_v57 }
  0x91   :  { %557 = vmatpush.msra.mxu2 %v402_v36  ;;  %602 = vmatpush.msra.mxu3 %v923_v58  ;;  %v366_v43 = vsub.f32 %v364_v18, %v365_v35 }
  0x92   :  { %516 = vmatpush.msra.mxu1 %v942_v4  ;;  %664 = vmatmul.msk.f32.vlgmr.msrb.gmra.mxu3 %vm331_vm2, %v660_v13 }
  0x93   :  { %465 = vmatpush.msra.mxu0 %v936_v1  ;;  %561 = vmatpush.msra.mxu2 %v408_v45  ;;  %v367_v53 = vand.u32 4294901760, %v366_v43 }
  0x94   :  { %604 = vmatpush.msra.mxu3 %v929_v61  ;;  %518 = vmatpush.msra.mxu1 %v961_v27 }
  0x95   :  { %468 = vmatpush.msra.mxu0 %v939_v2  ;;  %565 = vmatpush.msra.mxu2 %v414_v50 }
  0x96   :  { %606 = vmatpush.msra.mxu3 %v931_v62  ;;  %520 = vmatpush.msra.mxu1 %v1025_v7 }
  0x97   :  { %662 = vmatmul.msk.f32.vlgmr.msrb.gmra.mxu0 %vm77_vm0, %v659_v44  ;;  %368 = vmatmul.f32.vlgmr.msrb.gmra.mxu2 %v367_v53 }
  0x98   :  { %471 = vmatpush.msra.mxu0 %v949_v10  ;;  %569 = vmatpush.msra.mxu2 %v420_v54 }
  0x99   :  { %608 = vmatpush.msra.mxu3 %v942_v4  ;;  %522 = vmatpush.msra.mxu1 %v1033_v9 }
  0x9a   :  { %474 = vmatpush.msra.mxu0 %v952_v11  ;;  %573 = vmatpush.msra.mxu2 %v426_v24 }
  0x9b   :  { %610 = vmatpush.msra.mxu3 %v961_v27  ;;  %524 = vmatpush.msra.mxu1 %v1040_v25 }
  0x9c   :  { %477 = vmatpush.msra.mxu0 %v969_v37  ;;  %577 = vmatpush.msra.mxu2 %v432_v21 }
  0x9d   :  { %612 = vmatpush.msra.mxu3 %v1025_v7  ;;  %526 = vmatpush.msra.mxu1 %v1050_v30 }
  0x9e   :  { %480 = vmatpush.msra.mxu0 %v982_v46  ;;  %530 = vmatmul.f32.vlgmr.msra.gmra.mxu1 %v365_v35 }
  0x9f   :  { %581 = vmatpush.msra.mxu2 %v438_v42  ;;  %614 = vmatpush.msra.mxu3 %v1033_v9 }
  0xa0   :  { %483 = vmatpush.msra.mxu0 %v1036_v14 }
  0xa1   :  { %585 = vmatpush.msra.mxu2 %v444_v5  ;;  %616 = vmatpush.msra.mxu3 %v1040_v25 }
  0xa2   :  { %665 = vmatmul.msk.f32.vlgmr.msra.gmra.mxu2 %vm331_vm2, %v660_v13  ;;  %486 = vmatpush.msra.mxu0 %v1043_v15 }
  0xa3   :  { %618 = vmatpush.msra.mxu3 %v1050_v30 }
  0xa4   :  { %666 = vmatmul.msk.f32.vlgmr.msra.gmra.mxu3 %vm331_vm2, %v660_v13  ;;  %489 = vmatpush.msra.mxu0 %v1053_v33 }
  0xa6   :  { %492 = vmatpush.msra.mxu0 %v1061_v55 }
  0xa7   :  { %495 = vmatmul.f32.vlgmr.msra.gmra.mxu0 %v364_v18 }
 0x101   :  { %v172_v56 = vpop.f32.mrf.mxu1 }
 0x10a   :  { %v111_v57 = vpop.f32.mrf.mxu0  ;;  %v210_v61 = vpop.f32.mrf.mxu2 }
 0x10b   :  { %v173_v58 = vadd.f32 %v172_v56, %v111_v57  ;;  %v315_v10 = vpop.f32.mrf.mxu1 }
 0x10c   :  { %v241_v0 = vpop.f32.mrf.mxu3 }
 0x10d   :  { %v211_v62 = vadd.f32 %v210_v61, %v173_v58 }
 0x10f   :  { %v242_v1 = vadd.f32 %v241_v0, %v211_v62 }
 0x114   :  { %v286_v2 = vpop.f32.mrf.mxu0 }
 0x115   :  { %v287_v4 = vadd.f32 %v286_v2, %v242_v1  ;;  %v450_v22 = vpop.f32.mrf.mxu3 }
 0x117   :  { %v316_v11 = vadd.f32 %v315_v10, %v287_v4 }
 0x119   :  { %318 = vst [vmem:[#allocation7] sm:$0xff] %v316_v11 }
 0x11a   :  { %635 = dma.vmem_to_hbm [thread:$0]  %s631_s6, 128, %s633_s9, [#allocation4]   ;;  %v369_v17 = vpop.f32.mrf.mxu2 }
 0x11b   :  { %v451_v27 = vadd.f32 %v450_v22, %v369_v17  ;;  %v531_v45 = vpop.f32.mrf.mxu1 }
 0x124   :  { %v496_v36 = vpop.f32.mrf.mxu0 }
 0x125   :  { %v497_v37 = vadd.f32 %v496_v36, %v451_v27  ;;  %v588_v50 = vpop.f32.mrf.mxu2 }
 0x127   :  { %v532_v46 = vadd.f32 %v531_v45, %v497_v37  ;;  %v621_v28 = vpop.f32.mrf.mxu3 }
 0x129   :  { %v589_v54 = vadd.f32 %v588_v50, %v532_v46 }
 0x12b   :  { %v622_v19 = vadd.f32 %v621_v28, %v589_v54 }
 0x12d   :  { %624 = vst [vmem:[#allocation8] sm:$0xff] %v622_v19 }
 0x12e   :  { %646 = dma.vmem_to_hbm [thread:$0]  %s642_s11, 128, %s644_s4, [#allocation9]  }
 0x12f   :  { %776 = dma.done.wait [#allocation4], 128  }
 0x130   :  { %777 = vsyncadd [#allocation4], 4294967168 }
 0x131   :  { %778 = dma.done.wait [#allocation9], 128  }
 0x132   :  { %779 = vsyncadd [#allocation9], 4294967168 }
 0x133   :  { %655 = vsyncpa [#allocation3], 1 }
 0x134   :  { %656 = vsyncpa [#allocation6], 1 }
 0x135   :  { %657 = vsyncpa [#allocation4], 1 }
 0x136   :  { %658 = vsyncpa [#allocation9], 1 }

</bundles_post_ra>
